<compile_context>
chip_gen: v7x
topology: tpu7x:2x2x1
jax: 0.10.0
libtpu: 0.0.40
codegen_flags: <defaults>
</compile_context>

<pallas_src>
import jax
import jax.numpy as jnp
from jax.experimental import pallas as pl
from jax.experimental.pallas import tpu as pltpu


def _round_up(x, m):
    return ((x + m - 1) // m) * m


def coverage_loss_kernel(kp_ref, pc_ref, out_ref):
    kp = kp_ref[...]            # (TB, N_kp), native dtype
    pc = pc_ref[...]            # (TB, N_pc), native dtype

    # Per-row extent along the point (lane) axis; cast only the (TB, 1) results.
    dim_kp = (jnp.max(kp, axis=1, keepdims=True)
              - jnp.min(kp, axis=1, keepdims=True)).astype(jnp.float32)
    dim_pc = (jnp.max(pc, axis=1, keepdims=True)
              - jnp.min(pc, axis=1, keepdims=True)).astype(jnp.float32)

    # SmoothL1 (beta = 1.0), elementwise: 0.5*x^2 if |x| < 1 else |x| - 0.5.
    diff = dim_kp - dim_pc
    absd = jnp.abs(diff)
    elem = jnp.where(absd < 1.0, 0.5 * diff * diff, absd - 0.5)

    # One partial sum per grid step, broadcast over a dense (1, 8, 128) block so
    # the store is a full unmasked vst; the wrapper reads element [g, 0, 0].
    out_ref[...] = jnp.sum(elem) + jnp.zeros_like(out_ref)


def coverage_loss(kp, pc, *, row_block=None):
    """kp: (B, C, N_kp), pc: (B, C, N_pc) -> scalar f32 (SmoothL1 of axis extents)."""
    B, C, Nkp = kp.shape
    Bp, Cp, Npc = pc.shape
    assert B == Bp and C == Cp
    R = B * C

    # Flatten to sublane-dense (rows, points) layout; the point axis maps to lanes.
    kp_flat = kp.reshape(R, Nkp)
    pc_flat = pc.reshape(R, Npc)

    # Pick the row tile: large enough to amortize per-step overhead, small enough
    # that the double-buffered pipelined footprint stays ~<=24 MiB.
    if row_block is None:
        bytes_per_row_pair = kp.dtype.itemsize * Nkp + pc.dtype.itemsize * Npc
        cap = max(8, (24 * 1024 * 1024) // (2 * bytes_per_row_pair))
        row_block = max(8, (cap // 8) * 8)

    if R <= row_block:
        TB = R                     # single block == full row extent (always legal)
        G = 1
    else:
        TB = max(8, (row_block // 8) * 8)   # sublane-aligned row tiles
        G = pl.cdiv(R, TB)

    R_pad = G * TB
    if R_pad != R:
        pad = R_pad - R
        # Zero-padded rows have extent 0 in both inputs -> contribute 0 to the sum.
        kp_flat = jnp.pad(kp_flat, ((0, pad), (0, 0)))
        pc_flat = jnp.pad(pc_flat, ((0, pad), (0, 0)))

    partials = pl.pallas_call(
        coverage_loss_kernel,
        out_shape=jax.ShapeDtypeStruct((G, 8, 128), jnp.float32),
        grid_spec=pltpu.PrefetchScalarGridSpec(
            num_scalar_prefetch=0,
            grid=(G,),
            in_specs=[
                pl.BlockSpec((TB, Nkp), lambda g: (g, 0)),
                pl.BlockSpec((TB, Npc), lambda g: (g, 0)),
            ],
            out_specs=pl.BlockSpec((1, 8, 128), lambda g: (g, 0, 0)),
        ),
        compiler_params=pltpu.CompilerParams(
            # Fully parallel grid (per-block partial sums, no resident accumulator)
            # so v7x can shard the batch axis across both TensorCores.
            dimension_semantics=("parallel",),
            # Above the 16/32 MiB scoped defaults, with headroom on v7x (64 MiB).
            vmem_limit_bytes=48 * 1024 * 1024,
        ),
    )(kp_flat, pc_flat)

    # Tiny final reduction + mean in JAX (divisor is the true B*C element count).
    total = jnp.sum(partials[:, 0, 0])
    return total / jnp.float32(R)


def coverage_loss_ref(kp, pc):
    """Pure-JAX reference matching the PyTorch forward (SmoothL1, beta=1, mean)."""
    dim_kp = jnp.max(kp, axis=2) - jnp.min(kp, axis=2)
    dim_pc = jnp.max(pc, axis=2) - jnp.min(pc, axis=2)
    diff = dim_kp - dim_pc
    absd = jnp.abs(diff)
    elem = jnp.where(absd < 1.0, 0.5 * diff * diff, absd - 0.5)
    return jnp.mean(elem)


if __name__ == "__main__":
    key = jax.random.PRNGKey(0)
    k1, k2, k3, k4 = jax.random.split(key, 4)

    # Small case (single block, no row padding): B=2, C=3 (x,y,z), 64 kp / 256 pc points.
    B, C, N_KP, N_PC = 2, 3, 64, 256
    kp = jax.random.normal(k1, (B, C, N_KP), dtype=jnp.float32)
    pc = 2.0 * jax.random.normal(k2, (B, C, N_PC), dtype=jnp.float32)
    loss = jax.block_until_ready(coverage_loss(kp, pc))
    ref = jax.block_until_ready(coverage_loss_ref(kp, pc))
    assert jnp.allclose(loss, ref, rtol=1e-5, atol=1e-6), (loss, ref)

    # Multi-block case exercising row tiling + zero-padding + parallel grid.
    B2, C2, N_KP2, N_PC2 = 6, 3, 128, 512
    kp2 = jax.random.normal(k3, (B2, C2, N_KP2), dtype=jnp.float32)
    pc2 = 3.0 * jax.random.normal(k4, (B2, C2, N_PC2), dtype=jnp.float32)
    loss2 = jax.block_until_ready(coverage_loss(kp2, pc2, row_block=8))
    ref2 = jax.block_until_ready(coverage_loss_ref(kp2, pc2))
    assert jnp.allclose(loss2, ref2, rtol=1e-5, atol=1e-6), (loss2, ref2)

    print("KERNEL_OK")
</pallas_src>

<mosaic_0001>
module attributes {stable_mosaic.version = 11 : i64} {
  func.func @coverage_loss_kernel(%arg0: i32, %arg1: memref<6x64xf32, #tpu.memory_space<vmem>>, %arg2: memref<6x256xf32, #tpu.memory_space<vmem>>, %arg3: memref<1x8x128xf32, #tpu.memory_space<vmem>>) attributes {dimension_semantics = [#tpu.dimension_semantics<parallel>], iteration_bounds = array<i64: 1>, scalar_prefetch = 0 : i64, scratch_operands = 0 : i64, tpu.core_type = #tpu.core_type<tc>, window_params = [{transform_indices = @transform_0, window_bounds = array<i64: 6, 64>}, {transform_indices = @transform_1, window_bounds = array<i64: 6, 256>}, {transform_indices = @transform_2, window_bounds = array<i64: 1, 8, 128>}]} {
    %c0 = arith.constant 0 : index
    %c0_0 = arith.constant 0 : index
    %0 = vector.load %arg1[%c0, %c0_0] : memref<6x64xf32, #tpu.memory_space<vmem>>, vector<6x64xf32>
    %c0_1 = arith.constant 0 : index
    %c0_2 = arith.constant 0 : index
    %1 = vector.load %arg2[%c0_1, %c0_2] : memref<6x256xf32, #tpu.memory_space<vmem>>, vector<6x256xf32>
    %cst = arith.constant dense<0xFF800000> : vector<6xf32>
    %2 = vector.multi_reduction <maximumf>, %0, %cst [1] : vector<6x64xf32> to vector<6xf32>
    %3 = vector.shape_cast %2 : vector<6xf32> to vector<6x1xf32>
    %cst_3 = arith.constant dense<0x7F800000> : vector<6xf32>
    %4 = vector.multi_reduction <minimumf>, %0, %cst_3 [1] : vector<6x64xf32> to vector<6xf32>
    %5 = vector.shape_cast %4 : vector<6xf32> to vector<6x1xf32>
    %6 = arith.subf %3, %5 : vector<6x1xf32>
    %cst_4 = arith.constant dense<0xFF800000> : vector<6xf32>
    %7 = vector.multi_reduction <maximumf>, %1, %cst_4 [1] : vector<6x256xf32> to vector<6xf32>
    %8 = vector.shape_cast %7 : vector<6xf32> to vector<6x1xf32>
    %cst_5 = arith.constant dense<0x7F800000> : vector<6xf32>
    %9 = vector.multi_reduction <minimumf>, %1, %cst_5 [1] : vector<6x256xf32> to vector<6xf32>
    %10 = vector.shape_cast %9 : vector<6xf32> to vector<6x1xf32>
    %11 = arith.subf %8, %10 : vector<6x1xf32>
    %12 = arith.subf %6, %11 : vector<6x1xf32>
    %13 = math.absf %12 : vector<6x1xf32>
    %cst_6 = arith.constant 1.000000e+00 : f32
    %14 = vector.broadcast %cst_6 : f32 to vector<6x1xf32>
    %15 = arith.cmpf olt, %13, %14 : vector<6x1xf32>
    %cst_7 = arith.constant 5.000000e-01 : f32
    %16 = vector.broadcast %cst_7 : f32 to vector<6x1xf32>
    %17 = arith.mulf %16, %12 : vector<6x1xf32>
    %18 = arith.mulf %17, %12 : vector<6x1xf32>
    %cst_8 = arith.constant 5.000000e-01 : f32
    %19 = vector.broadcast %cst_8 : f32 to vector<6x1xf32>
    %20 = arith.subf %13, %19 : vector<6x1xf32>
    %21 = arith.select %15, %18, %20 : vector<6x1xi1>, vector<6x1xf32>
    %22 = vector.shape_cast %21 : vector<6x1xf32> to vector<1x6x1xf32>
    %cst_9 = arith.constant dense<0.000000e+00> : vector<1xf32>
    %23 = vector.multi_reduction <add>, %22, %cst_9 [1, 2] : vector<1x6x1xf32> to vector<1xf32>
    %24 = vector.shape_cast %23 : vector<1xf32> to vector<1x1x1xf32>
    %25 = vector.extract %24[0, 0, 0] : f32 from vector<1x1x1xf32>
    %cst_10 = arith.constant 0.000000e+00 : f32
    %26 = vector.broadcast %cst_10 : f32 to vector<1x8x128xf32>
    %27 = vector.broadcast %25 : f32 to vector<1x8x128xf32>
    %28 = arith.addf %27, %26 : vector<1x8x128xf32>
    %c0_11 = arith.constant 0 : index
    %c0_12 = arith.constant 0 : index
    %c0_13 = arith.constant 0 : index
    %29 = vector.load %arg3[%c0_11, %c0_12, %c0_13] : memref<1x8x128xf32, #tpu.memory_space<vmem>>, vector<1x8x128xf32>
    tpu.vector_store %arg3[%c0_11, %c0_12, %c0_13], %28 {strides = array<i32>} : memref<1x8x128xf32, #tpu.memory_space<vmem>>, vector<1x8x128xf32>,
    return
  }
  func.func @transform_0(%arg0: i32) -> (i32, i32) {
    %c0_i32 = arith.constant 0 : i32
    %c0_i32_0 = arith.constant 0 : i32
    return %arg0, %c0_i32 : i32, i32
  }
  func.func @transform_1(%arg0: i32) -> (i32, i32) {
    %c0_i32 = arith.constant 0 : i32
    %c0_i32_0 = arith.constant 0 : i32
    return %arg0, %c0_i32 : i32, i32
  }
  func.func @transform_2(%arg0: i32) -> (i32, i32, i32) {
    %c0_i32 = arith.constant 0 : i32
    %c0_i32_0 = arith.constant 0 : i32
    %c0_i32_1 = arith.constant 0 : i32
    return %arg0, %c0_i32, %c0_i32_0 : i32, i32, i32
  }
}

</mosaic_0001>

<bundles_post_ra>
// kernel: tpu_custom_call.1
= control target key start
LH: loop header
LB: loop body
LE: loop exit
PB: predicated region body
PF: predicated region fallthrough
CT: control target
= control target key end

     0   :  { %7 = vsyncpa [#allocation3], 0  ;;  %s228_s0 = inlined_call_operand.hbm [shape: f32[6,64], index: 0, kind: input, shape index: {}]   ;;  %s229_s1 = inlined_call_operand.hbm [shape: f32[6,256], index: 1, kind: input, shape index: {}]   ;;  %s230_s2 = inlined_call_operand.hbm [shape: f32[1,8,128], index: 2, kind: output, shape index: {}]  }
   0x1   :  { %8 = vsyncpa [#allocation6], 0 }
   0x2   :  { %9 = vsyncpa [#allocation4], 0  ;;  %s174_s9 = smov [#allocation2]   ;;  %s175_s11 = smov [#allocation5]  }
   0x3   :  { %s16_s10 = sshll.u32 %s174_s9, 4  ;;  %s26_s12 = sshll.u32 %s175_s11, 4  ;;  %s17_s10 = int_to_ptr.vmem [resolvable:$true] %s16_s10  ;;  %s27_s12 = int_to_ptr.vmem [resolvable:$true] %s26_s12 }
   0x4   :  { %s102_s15 = scalar_lea.hbm %s228_s0, 128 }
   0x5   :  { %p103_p0 = scmp.ne.s32.totalorder %s228_s0, %s102_s15  ;;  %p106_p1 = scmp.lt.u32.totalorder %s102_s15, %s228_s0 }
   0x7   :  { %p108_p2 = pnand %p106_p1, %p103_p0 }
   0x9   :  { %111 = shalt.err (!%p108_p2)
}
   0xa   :  { %s112_s20 = scalar_lea.vmem %s17_s10, 128  ;;  %p117_p4 = scmp.lt.s32.totalorder %s17_s10, %s17_s10 }
   0xb   :  { %p113_p3 = scmp.ne.s32.totalorder %s17_s10, %s112_s20  ;;  %p118_p5 = scmp.lt.s32.totalorder %s112_s20, %s112_s20 }
   0xd   :  { %p119_p6 = por %p118_p5, %p117_p4 }
   0xf   :  { %p120_p7 = pnand %p119_p6, %p113_p3 }
  0x11   :  { %123 = shalt.err (!%p120_p7)
}
  0x12   :  { %19 = dma.hbm_to_vmem [thread:$0]  %s228_s0, 128, %s17_s10, [#allocation3]  }
  0x13   :  { %s124_s25 = scalar_lea.hbm %s229_s1, 256 }
  0x14   :  { %p125_p8 = scmp.ne.s32.totalorder %s229_s1, %s124_s25  ;;  %p128_p9 = scmp.lt.u32.totalorder %s124_s25, %s229_s1 }
  0x16   :  { %p130_p10 = pnand %p128_p9, %p125_p8 }
  0x18   :  { %133 = shalt.err (!%p130_p10)
}
  0x19   :  { %s134_s30 = scalar_lea.vmem %s27_s12, 256  ;;  %p139_p12 = scmp.lt.s32.totalorder %s27_s12, %s27_s12 }
  0x1a   :  { %p135_p11 = scmp.ne.s32.totalorder %s27_s12, %s134_s30  ;;  %p140_p13 = scmp.lt.s32.totalorder %s134_s30, %s134_s30 }
  0x1c   :  { %p141_p0 = por %p140_p13, %p139_p12 }
  0x1e   :  { %p142_p1 = pnand %p141_p0, %p135_p11 }
  0x20   :  { %145 = shalt.err (!%p142_p1)
}
  0x21   :  { %29 = dma.hbm_to_vmem [thread:$0]  %s229_s1, 256, %s27_s12, [#allocation6]  }
  0x22   :  { %168 = dma.done.wait [#allocation3], 128  }
  0x23   :  { %169 = vsyncadd [#allocation3], 4294967168 }
  0x24   :  { %170 = dma.done.wait [#allocation6], 256  }
  0x25   :  { %171 = vsyncadd [#allocation6], 4294967040  ;;  %vm39_vm0 = vcmask 521216   ;;  %vm47_vm1 = vcmask 1045504   ;;  %v36_v0 = vld [vmem:[#allocation2] sm:$0x3f] }
  0x26   :  { %v37_v1 = vld [vmem:[#allocation5] sm:$0x3f]  ;;  %v38_v2 = vld [vmem:[#allocation5 + $0x8] sm:$0x3f]  ;;  %v40_v3 = vsel %vm39_vm0, %v36_v0, -inf  ;;  %v43_v9 = vsel %vm39_vm0, %v36_v0, inf }
  0x27   :  { %v48_v4 = vsel %vm47_vm1, %v37_v1, -inf  ;;  %v49_v5 = vsel %vm47_vm1, %v38_v2, -inf  ;;  %41 = vmax.xlane.f32.xlu0 %v40_v3  ;;  %v53_v7 = vsel %vm47_vm1, %v37_v1, inf  ;;  %v54_v8 = vsel %vm47_vm1, %v38_v2, inf  ;;  %s176_s1 = smov [#allocation7]  }
  0x28   :  { %v50_v6 = vmax.f32 %v48_v4, %v49_v5  ;;  %v55_v10 = vmin.f32 %v53_v7, %v54_v8  ;;  %vm66_vm3 = vcmask 5120   ;;  %s86_s4 = sshll.u32 %s176_s1, 4  ;;  %s87_s4 = int_to_ptr.vmem [resolvable:$true] %s86_s4 }
  0x29   :  { %s146_s6 = scalar_lea.vmem %s87_s4, 128  ;;  %p151_p3 = scmp.lt.s32.totalorder %s87_s4, %s87_s4 }
  0x2a   :  { %51 = vmax.xlane.f32.xlu1 %v50_v6  ;;  %p147_p2 = scmp.ne.s32.totalorder %s87_s4, %s146_s6  ;;  %p152_p4 = scmp.lt.s32.totalorder %s146_s6, %s146_s6 }
  0x2b   :  { %44 = vmin.xlane.f32.xlu0 %v43_v9 }
  0x2c   :  { %p153_p5 = por %p152_p4, %p151_p3 }
  0x2e   :  { %56 = vmin.xlane.f32.xlu1 %v55_v10  ;;  %p154_p6 = pnand %p153_p5, %p147_p2 }
  0xb4   :  { %v42_v11 = vpop.xlane.xlu0 %41 }
  0xb7   :  { %v52_v12 = vpop.xlane.xlu1 %51 }
  0xb8   :  { %v45_v13 = vpop.xlane.xlu0 %44 }
  0xb9   :  { %v46_v15 = vsub.f32 %v42_v11, %v45_v13 }
  0xbb   :  { %v57_v14 = vpop.xlane.xlu1 %56 }
  0xbc   :  { %v58_v16 = vsub.f32 %v52_v12, %v57_v14 }
  0xbe   :  { %v59_v17 = vsub.f32 %v46_v15, %v58_v16 }
  0xc0   :  { %v62_v18 = vmul.f32 0.5, %v59_v17  ;;  %v60_v19 = vand.u32 2147483647, %v59_v17 }
  0xc2   :  { %vm61_vm2 = vcmp.lt.f32.partialorder %v60_v19, 1.0  ;;  %v63_v20 = vmul.f32 %v62_v18, %v59_v17  ;;  %v96_v21 = vadd.f32 -0.5, %v60_v19 }
  0xc4   :  { %v65_v22 = vsel %vm61_vm2, %v63_v20, %v96_v21 }
  0xc5   :  { %v67_v23 = vsel %vm66_vm3, %v65_v22, 0.0 }
  0xc6   :  { %68 = vadd.xlane.f32.xlu0 %v67_v23 }
 0x153   :  { %v69_v24 = vpop.xlane.xlu0 %68 }
 0x154   :  { %v70_v25 = vrot.slane %v69_v24, 4 }
 0x156   :  { %v71_v26 = vadd.f32 %v70_v25, %v69_v24 }
 0x158   :  { %v72_v27 = vrot.slane %v71_v26, 2 }
 0x15a   :  { %v73_v28 = vadd.f32 %v72_v27, %v71_v26 }
 0x15c   :  { %v74_v29 = vrot.slane %v73_v28, 1 }
 0x15e   :  { %v75_v30 = vadd.f32 %v74_v29, %v73_v28 }
 0x160   :  { %97 = vpush %v75_v30 }
 0x191   :  { %s98_s5 = spop %97 }
 0x192   :  { %v77_v31 = vstv %s98_s5 }
 0x193   :  { %79 = vst [vmem:[#allocation7] sm:$0xff] %v77_v31 }
 0x194   :  { %157 = shalt.err (!%p154_p6)
}
 0x195   :  { %s158_s9 = scalar_lea.hbm %s230_s2, 128 }
 0x196   :  { %p159_p7 = scmp.ne.s32.totalorder %s230_s2, %s158_s9  ;;  %p162_p8 = scmp.lt.u32.totalorder %s158_s9, %s230_s2 }
 0x198   :  { %p164_p9 = pnand %p162_p8, %p159_p7 }
 0x19a   :  { %167 = shalt.err (!%p164_p9)
}
 0x19b   :  { %89 = dma.vmem_to_hbm [thread:$0]  %s87_s4, 128, %s230_s2, [#allocation4]  }
 0x19c   :  { %172 = dma.done.wait [#allocation4], 128  }
 0x19d   :  { %173 = vsyncadd [#allocation4], 4294967168 }
 0x19e   :  { %93 = vsyncpa [#allocation3], 1 }
 0x19f   :  { %94 = vsyncpa [#allocation6], 1 }
 0x1a0   :  { %95 = vsyncpa [#allocation4], 1 }

</bundles_post_ra>
